<compile_context>
chip_gen: v5e
topology: v5e:2x2
jax: 0.10.0
libtpu: 0.0.40
codegen_flags: <defaults>
</compile_context>

<pallas_src>
import numpy as np
import jax
import jax.numpy as jnp
from jax import lax
from jax.experimental import pallas as pl
from jax.experimental.pallas import tpu as pltpu

AMP_EPS = float(np.exp(-10.0))  # torch.exp(torch.tensor(-10)) as a f32 scalar
TINY = 1e-30                    # guards rsqrt against exact zeros


# ----------------------------- host-side parameter setup ---------------------
def _dft_matrices(n):
    """Real/imag parts of the n-point DFT matrix F[k,m] = exp(-2πi k m / n)."""
    k = np.arange(n)
    ang = -2.0 * np.pi * np.outer(k, k) / n
    return np.cos(ang).astype(np.float32), np.sin(ang).astype(np.float32)


def _block_diag(mat, reps):
    """Block-diagonal repetition of `mat` (reps blocks)."""
    n = mat.shape[0]
    out = np.zeros((reps * n, reps * n), mat.dtype)
    for t in range(reps):
        out[t * n:(t + 1) * n, t * n:(t + 1) * n] = mat
    return out


def _vmem_limit_bytes(H, L, mats):
    """Rough VMEM budget: constants (maybe double-buffered) + live f32 temps + io."""
    const = sum(int(np.prod(m.shape)) * m.dtype.itemsize for m in mats)
    temps = 14 * H * L * 4          # ~peak live f32 (H, L) intermediates
    io = 2 * 2 * H * L * 4          # double-buffered image in + out blocks
    need = int((2 * const + temps + io) * 1.5) + (8 << 20)
    try:
        cap = int(pltpu.get_tpu_info().vmem_capacity_bytes)
    except Exception:               # pragma: no cover - conservative fallback
        cap = 64 << 20              # v7x per-core VMEM (smallest in the fleet)
    return max(32 << 20, min(need, cap * 7 // 8))


# ------------------------------ in-kernel helpers -----------------------------
def _conv3(x, axis, t_mid, t_side, keep_fwd, keep_bwd):
    """1-D 3-tap symmetric conv (t_side, t_mid, t_side) with zero padding.

    `keep_fwd` masks the +1-shift (value taken from index i-1) and `keep_bwd`
    masks the -1-shift (value from i+1); the masks also cut packed-image
    boundaries along the lane axis.
    """
    n = x.shape[axis]
    plus = jnp.where(keep_fwd, pltpu.roll(x, 1, axis), 0.0)        # x[i-1]
    minus = jnp.where(keep_bwd, pltpu.roll(x, n - 1, axis), 0.0)   # x[i+1]
    return t_mid * x + t_side * (plus + minus)


def _sr_body(x_ref, out_ref, F, H, W, TB):
    L = TB * W
    bf = lambda a: a.astype(jnp.bfloat16)
    dot = lambda a, b: jnp.dot(a, b, preferred_element_type=jnp.float32)

    # ---- hoisted boundary masks (shared by both 3x3 convolutions) ----
    row = lax.broadcasted_iota(jnp.int32, (H, L), 0)
    col = lax.broadcasted_iota(jnp.int32, (H, L), 1)
    cimg = (col & (W - 1)) if (W & (W - 1)) == 0 else (col % W)  # lane pos in image
    keep_u, keep_d = row > 0, row < H - 1        # H-axis (sublane) shifts
    keep_l, keep_r = cimg > 0, cimg < W - 1      # W-axis (lane) shifts, per image

    # ---- forward 2-D DFT: Y = F_H @ X @ blockdiag(F_W); Karatsuba, bf16/f32 ----
    Xb = bf(x_ref[0])                            # (H, L)
    T1 = dot(F['fhr'], Xb)
    T2 = dot(F['fhi'], Xb)
    m1 = dot(bf(T1), F['gwr'])
    m2 = dot(bf(T2), F['gwi'])
    m3 = dot(bf(T1 + T2), F['gws'])              # (Fwr+Fwi) hoisted host-side
    Yr = m1 - m2
    Yi = m3 - m1 - m2

    # ---- spectral residual (no arctan2 / sin / cos) ----
    r2 = Yr * Yr + Yi * Yi
    inv_r = lax.rsqrt(r2 + TINY)                 # ~ 1/|Y|          (EUP)
    amp = r2 * inv_r + AMP_EPS                   # == |Y| + exp(-10)
    log_amp = jnp.log(amp)

    third = 1.0 / 3.0                            # 3x3 average conv, zero padding
    blur = _conv3(log_amp, 0, third, third, keep_u, keep_d)
    amp_filt = _conv3(blur, 1, third, third, keep_l, keep_r)

    # exp(amp_sr + 1j*phase) == amp * exp(-amp_filter) * (Yr + i*Yi) / |Y|
    s = amp * jnp.exp(-amp_filt) * inv_r
    Zr = s * Yr
    Zi = s * Yi

    # ---- inverse 2-D DFT (un-normalised): conj(F_H) @ Z @ conj(blockdiag(F_W)) ----
    u1 = dot(F['fhr'], bf(Zr))
    u2 = dot(F['fhi'], bf(Zi))
    u3 = dot(F['fhd'], bf(Zr + Zi))              # (Fhr-Fhi) hoisted host-side
    Ur = u1 + u2
    Ui = u3 - u1 + u2
    v1 = dot(bf(Ur), F['gwr'])
    v2 = dot(bf(Ui), F['gwi'])
    v3 = dot(bf(Ur + Ui), F['gwd'])              # (Fwr-Fwi) hoisted host-side
    Vr = v1 + v2
    Vi = v3 - v1 + v2
    mag = jnp.sqrt(Vr * Vr + Vi * Vi)            # == (H*W) * |ifft2(Z)|

    # ---- 3x3 gaussian ([1,2,1]/4 x [1,2,1]/4), 1/(H*W) folded into row taps ----
    gh = 0.25 / (H * W)
    g = _conv3(mag, 0, 2.0 * gh, gh, keep_u, keep_d)
    out_ref[0] = _conv3(g, 1, 0.5, 0.25, keep_l, keep_r)


def _make_kernel(H, W, TB, idx):
    n_mats = max(idx.values()) + 1

    def kernel(*refs):
        x_ref = refs[0]
        mat_refs = refs[1:1 + n_mats]
        out_ref = refs[1 + n_mats]
        loaded = [r[...] for r in mat_refs]      # each unique constant loaded once
        mats = {name: loaded[i] for name, i in idx.items()}
        _sr_body(x_ref, out_ref, mats, H, W, TB)

    return kernel


# ----------------------------------- wrapper ---------------------------------
def sr_layer(x, channel=1, images_per_block=None):
    assert channel == 1, "the reference module only executes for channel == 1"
    B, H, W = x.shape

    # keep narrow dtypes through the DMA, cast in-kernel (review item)
    if x.dtype not in (jnp.float32, jnp.bfloat16, jnp.float16):
        x = x.astype(jnp.float32)

    # ---- images per grid step: make the packed lane dimension >= 128 ----
    TB = max(1, (128 + W - 1) // W) if images_per_block is None else int(images_per_block)
    L = TB * W

    # ---- pad batch to a multiple of TB; keep the grid even for v7x megacore ----
    B_pad = ((B + TB - 1) // TB) * TB
    G = B_pad // TB
    if G > 1 and (G % 2 == 1):
        B_pad += TB
        G += 1
    if B_pad != B:
        x = jnp.concatenate([x, jnp.zeros((B_pad - B, H, W), x.dtype)], axis=0)

    # ---- host-side lane packing: (B,H,W) -> (G, H, TB*W) ----
    xp = x.reshape(G, TB, H, W).transpose(0, 2, 1, 3).reshape(G, H, L)

    # ---- bf16 DFT constants (Karatsuba sums/differences hoisted host-side) ----
    fhr, fhi = _dft_matrices(H)
    tobf = lambda a: jnp.asarray(a, dtype=jnp.bfloat16)
    if TB == 1 and H == W:
        # square, unpacked: one matrix family serves both sides
        mats = [tobf(fhr), tobf(fhi), tobf(fhr + fhi), tobf(fhr - fhi)]
        idx = dict(fhr=0, fhi=1, fhd=3, gwr=0, gwi=1, gws=2, gwd=3)
    else:
        fwr, fwi = _dft_matrices(W)
        gwr, gwi = _block_diag(fwr, TB), _block_diag(fwi, TB)
        mats = [tobf(fhr), tobf(fhi), tobf(fhr - fhi),
                tobf(gwr), tobf(gwi), tobf(gwr + gwi), tobf(gwr - gwi)]
        idx = dict(fhr=0, fhi=1, fhd=2, gwr=3, gwi=4, gws=5, gwd=6)

    kernel = _make_kernel(H, W, TB, idx)
    # constant index_map -> fetched once, reused across all grid steps
    mat_specs = [pl.BlockSpec(m.shape, lambda g: (0, 0)) for m in mats]

    out_p = pl.pallas_call(
        kernel,
        out_shape=jax.ShapeDtypeStruct((G, H, L), jnp.float32),
        grid=(G,),
        in_specs=[pl.BlockSpec((1, H, L), lambda g: (g, 0, 0))] + mat_specs,
        out_specs=pl.BlockSpec((1, H, L), lambda g: (g, 0, 0)),
        compiler_params=pltpu.CompilerParams(
            dimension_semantics=("parallel",),        # batch blocks across TCs
            vmem_limit_bytes=_vmem_limit_bytes(H, L, mats)),
    )(xp, *mats)

    # ---- unpack lanes back to (B, H, W) and drop batch padding ----
    out = out_p.reshape(G, H, TB, W).transpose(0, 2, 1, 3).reshape(B_pad, H, W)
    return out[:B]


# ------------------------- pure-JAX reference (for sanity) -------------------
def sr_reference(x):
    avg_k = np.full((3, 3), 1.0 / 9.0, np.float32)
    gau_k = np.array([[1 / 16, 1 / 8, 1 / 16],
                      [1 / 8, 1 / 4, 1 / 8],
                      [1 / 16, 1 / 8, 1 / 16]], np.float32)

    def conv3x3(img, k):
        return lax.conv_general_dilated(img[None, None].astype(jnp.float32),
                                        jnp.asarray(k)[None, None],
                                        window_strides=(1, 1),
                                        padding="SAME")[0, 0]

    outs = []
    for b in range(x.shape[0]):
        x1 = x[b][None, None]                       # (1,1,H,W)
        f = jnp.fft.fftn(x1)
        amp = jnp.abs(f) + AMP_EPS
        log_amp = jnp.log(amp)[0, 0]
        phase = jnp.angle(f)[0, 0]
        amp_sr = log_amp - conv3x3(log_amp, avg_k)
        z = jnp.exp(amp_sr + 1j * phase)
        sr = jnp.abs(jnp.fft.ifftn(z[None, None]))[0, 0]
        outs.append(conv3x3(sr, gau_k))
    return jnp.stack(outs, axis=0)


if __name__ == "__main__":
    key = jax.random.PRNGKey(0)
    B, H, W = 16, 16, 16                 # 16 images -> TB=8 packed, grid=(2,)
    x = jax.random.normal(key, (B, H, W), dtype=jnp.float32)

    out = jax.block_until_ready(sr_layer(x, channel=1))

    ref = sr_reference(x)
    np.testing.assert_allclose(np.asarray(out), np.asarray(ref),
                               rtol=5e-2, atol=5e-3)
    print("KERNEL_OK")
</pallas_src>

<mosaic_0001>
module attributes {stable_mosaic.version = 11 : i64} {
  func.func @kernel(%arg0: i32, %arg1: memref<1x16x128xf32, #tpu.memory_space<vmem>>, %arg2: memref<16x16xbf16, #tpu.memory_space<vmem>>, %arg3: memref<16x16xbf16, #tpu.memory_space<vmem>>, %arg4: memref<16x16xbf16, #tpu.memory_space<vmem>>, %arg5: memref<128x128xbf16, #tpu.memory_space<vmem>>, %arg6: memref<128x128xbf16, #tpu.memory_space<vmem>>, %arg7: memref<128x128xbf16, #tpu.memory_space<vmem>>, %arg8: memref<128x128xbf16, #tpu.memory_space<vmem>>, %arg9: memref<1x16x128xf32, #tpu.memory_space<vmem>>) attributes {dimension_semantics = [#tpu.dimension_semantics<parallel>], iteration_bounds = array<i64: 2>, scalar_prefetch = 0 : i64, scratch_operands = 0 : i64, tpu.core_type = #tpu.core_type<tc>, window_params = [{transform_indices = @transform_0, window_bounds = array<i64: 1, 16, 128>}, {pipeline_mode = #tpu.pipeline_mode<synchronous>, transform_indices = @transform_1, window_bounds = array<i64: 16, 16>}, {pipeline_mode = #tpu.pipeline_mode<synchronous>, transform_indices = @transform_2, window_bounds = array<i64: 16, 16>}, {pipeline_mode = #tpu.pipeline_mode<synchronous>, transform_indices = @transform_3, window_bounds = array<i64: 16, 16>}, {pipeline_mode = #tpu.pipeline_mode<synchronous>, transform_indices = @transform_4, window_bounds = array<i64: 128, 128>}, {pipeline_mode = #tpu.pipeline_mode<synchronous>, transform_indices = @transform_5, window_bounds = array<i64: 128, 128>}, {pipeline_mode = #tpu.pipeline_mode<synchronous>, transform_indices = @transform_6, window_bounds = array<i64: 128, 128>}, {pipeline_mode = #tpu.pipeline_mode<synchronous>, transform_indices = @transform_7, window_bounds = array<i64: 128, 128>}, {transform_indices = @transform_8, window_bounds = array<i64: 1, 16, 128>}]} {
    %c0 = arith.constant 0 : index
    %c0_0 = arith.constant 0 : index
    %0 = vector.load %arg2[%c0, %c0_0] : memref<16x16xbf16, #tpu.memory_space<vmem>>, vector<16x16xbf16>
    %c0_1 = arith.constant 0 : index
    %c0_2 = arith.constant 0 : index
    %1 = vector.load %arg3[%c0_1, %c0_2] : memref<16x16xbf16, #tpu.memory_space<vmem>>, vector<16x16xbf16>
    %c0_3 = arith.constant 0 : index
    %c0_4 = arith.constant 0 : index
    %2 = vector.load %arg4[%c0_3, %c0_4] : memref<16x16xbf16, #tpu.memory_space<vmem>>, vector<16x16xbf16>
    %c0_5 = arith.constant 0 : index
    %c0_6 = arith.constant 0 : index
    %3 = vector.load %arg5[%c0_5, %c0_6] : memref<128x128xbf16, #tpu.memory_space<vmem>>, vector<128x128xbf16>
    %c0_7 = arith.constant 0 : index
    %c0_8 = arith.constant 0 : index
    %4 = vector.load %arg6[%c0_7, %c0_8] : memref<128x128xbf16, #tpu.memory_space<vmem>>, vector<128x128xbf16>
    %c0_9 = arith.constant 0 : index
    %c0_10 = arith.constant 0 : index
    %5 = vector.load %arg7[%c0_9, %c0_10] : memref<128x128xbf16, #tpu.memory_space<vmem>>, vector<128x128xbf16>
    %c0_11 = arith.constant 0 : index
    %c0_12 = arith.constant 0 : index
    %6 = vector.load %arg8[%c0_11, %c0_12] : memref<128x128xbf16, #tpu.memory_space<vmem>>, vector<128x128xbf16>
    %7 = tpu.iota {dimensions = array<i32: 0>} : vector<16x128xi32>
    %8 = tpu.iota {dimensions = array<i32: 1>} : vector<16x128xi32>
    %c15_i32 = arith.constant 15 : i32
    %9 = vector.broadcast %c15_i32 : i32 to vector<16x128xi32>
    %10 = arith.andi %8, %9 : vector<16x128xi32>
    %c0_i32 = arith.constant 0 : i32
    %11 = vector.broadcast %c0_i32 : i32 to vector<16x128xi32>
    %12 = arith.cmpi sgt, %7, %11 : vector<16x128xi32>
    %c15_i32_13 = arith.constant 15 : i32
    %13 = vector.broadcast %c15_i32_13 : i32 to vector<16x128xi32>
    %14 = arith.cmpi slt, %7, %13 : vector<16x128xi32>
    %c0_i32_14 = arith.constant 0 : i32
    %15 = vector.broadcast %c0_i32_14 : i32 to vector<16x128xi32>
    %16 = arith.cmpi sgt, %10, %15 : vector<16x128xi32>
    %c15_i32_15 = arith.constant 15 : i32
    %17 = vector.broadcast %c15_i32_15 : i32 to vector<16x128xi32>
    %18 = arith.cmpi slt, %10, %17 : vector<16x128xi32>
    %c0_16 = arith.constant 0 : index
    %c0_17 = arith.constant 0 : index
    %c0_18 = arith.constant 0 : index
    %19 = vector.load %arg1[%c0_16, %c0_17, %c0_18] : memref<1x16x128xf32, #tpu.memory_space<vmem>>, vector<1x16x128xf32>
    %20 = vector.shape_cast %19 : vector<1x16x128xf32> to vector<16x128xf32>
    %21 = arith.truncf %20 : vector<16x128xf32> to vector<16x128xbf16>
    %cst = arith.constant dense<0.000000e+00> : vector<16x128xf32>
    %22 = tpu.matmul %0, %21, %cst {dimension_numbers = #tpu.dot_dimension_numbers<[1], [0], [0], [1], [0, 0, 1, 1], [], []>} : vector<16x16xbf16>, vector<16x128xbf16>, vector<16x128xf32> -> vector<16x128xf32>
    %cst_19 = arith.constant dense<0.000000e+00> : vector<16x128xf32>
    %23 = tpu.matmul %1, %21, %cst_19 {dimension_numbers = #tpu.dot_dimension_numbers<[1], [0], [0], [1], [0, 0, 1, 1], [], []>} : vector<16x16xbf16>, vector<16x128xbf16>, vector<16x128xf32> -> vector<16x128xf32>
    %24 = arith.truncf %22 : vector<16x128xf32> to vector<16x128xbf16>
    %cst_20 = arith.constant dense<0.000000e+00> : vector<16x128xf32>
    %25 = tpu.matmul %24, %3, %cst_20 {dimension_numbers = #tpu.dot_dimension_numbers<[1], [0], [0], [1], [0, 0, 1, 1], [], []>} : vector<16x128xbf16>, vector<128x128xbf16>, vector<16x128xf32> -> vector<16x128xf32>
    %26 = arith.truncf %23 : vector<16x128xf32> to vector<16x128xbf16>
    %cst_21 = arith.constant dense<0.000000e+00> : vector<16x128xf32>
    %27 = tpu.matmul %26, %4, %cst_21 {dimension_numbers = #tpu.dot_dimension_numbers<[1], [0], [0], [1], [0, 0, 1, 1], [], []>} : vector<16x128xbf16>, vector<128x128xbf16>, vector<16x128xf32> -> vector<16x128xf32>
    %28 = arith.addf %22, %23 : vector<16x128xf32>
    %29 = arith.truncf %28 : vector<16x128xf32> to vector<16x128xbf16>
    %cst_22 = arith.constant dense<0.000000e+00> : vector<16x128xf32>
    %30 = tpu.matmul %29, %5, %cst_22 {dimension_numbers = #tpu.dot_dimension_numbers<[1], [0], [0], [1], [0, 0, 1, 1], [], []>} : vector<16x128xbf16>, vector<128x128xbf16>, vector<16x128xf32> -> vector<16x128xf32>
    %31 = arith.subf %25, %27 : vector<16x128xf32>
    %32 = arith.subf %30, %25 : vector<16x128xf32>
    %33 = arith.subf %32, %27 : vector<16x128xf32>
    %34 = arith.mulf %31, %31 : vector<16x128xf32>
    %35 = arith.mulf %33, %33 : vector<16x128xf32>
    %36 = arith.addf %34, %35 : vector<16x128xf32>
    %cst_23 = arith.constant 1.000000e-30 : f32
    %37 = vector.broadcast %cst_23 : f32 to vector<16x128xf32>
    %38 = arith.addf %36, %37 : vector<16x128xf32>
    %39 = math.rsqrt %38 : vector<16x128xf32>
    %40 = arith.mulf %36, %39 : vector<16x128xf32>
    %cst_24 = arith.constant 4.5399931E-5 : f32
    %41 = vector.broadcast %cst_24 : f32 to vector<16x128xf32>
    %42 = arith.addf %40, %41 : vector<16x128xf32>
    %43 = math.log %42 : vector<16x128xf32>
    %c1_i32 = arith.constant 1 : i32
    %44 = tpu.dynamic_rotate %43 by %c1_i32 dim 0 : vector<16x128xf32>, i32 -> vector<16x128xf32>
    %cst_25 = arith.constant 0.000000e+00 : f32
    %45 = vector.broadcast %cst_25 : f32 to vector<16x128xf32>
    %46 = arith.select %12, %44, %45 : vector<16x128xi1>, vector<16x128xf32>
    %c15_i32_26 = arith.constant 15 : i32
    %47 = tpu.dynamic_rotate %43 by %c15_i32_26 dim 0 : vector<16x128xf32>, i32 -> vector<16x128xf32>
    %cst_27 = arith.constant 0.000000e+00 : f32
    %48 = vector.broadcast %cst_27 : f32 to vector<16x128xf32>
    %49 = arith.select %14, %47, %48 : vector<16x128xi1>, vector<16x128xf32>
    %cst_28 = arith.constant 0.333333343 : f32
    %50 = vector.broadcast %cst_28 : f32 to vector<16x128xf32>
    %51 = arith.mulf %50, %43 : vector<16x128xf32>
    %52 = arith.addf %46, %49 : vector<16x128xf32>
    %cst_29 = arith.constant 0.333333343 : f32
    %53 = vector.broadcast %cst_29 : f32 to vector<16x128xf32>
    %54 = arith.mulf %53, %52 : vector<16x128xf32>
    %55 = arith.addf %51, %54 : vector<16x128xf32>
    %c1_i32_30 = arith.constant 1 : i32
    %56 = tpu.dynamic_rotate %55 by %c1_i32_30 dim 1 : vector<16x128xf32>, i32 -> vector<16x128xf32>
    %cst_31 = arith.constant 0.000000e+00 : f32
    %57 = vector.broadcast %cst_31 : f32 to vector<16x128xf32>
    %58 = arith.select %16, %56, %57 : vector<16x128xi1>, vector<16x128xf32>
    %c127_i32 = arith.constant 127 : i32
    %59 = tpu.dynamic_rotate %55 by %c127_i32 dim 1 : vector<16x128xf32>, i32 -> vector<16x128xf32>
    %cst_32 = arith.constant 0.000000e+00 : f32
    %60 = vector.broadcast %cst_32 : f32 to vector<16x128xf32>
    %61 = arith.select %18, %59, %60 : vector<16x128xi1>, vector<16x128xf32>
    %cst_33 = arith.constant 0.333333343 : f32
    %62 = vector.broadcast %cst_33 : f32 to vector<16x128xf32>
    %63 = arith.mulf %62, %55 : vector<16x128xf32>
    %64 = arith.addf %58, %61 : vector<16x128xf32>
    %cst_34 = arith.constant 0.333333343 : f32
    %65 = vector.broadcast %cst_34 : f32 to vector<16x128xf32>
    %66 = arith.mulf %65, %64 : vector<16x128xf32>
    %67 = arith.addf %63, %66 : vector<16x128xf32>
    %cst_35 = arith.constant 0.000000e+00 : f32
    %68 = vector.broadcast %cst_35 : f32 to vector<16x128xf32>
    %69 = arith.subf %68, %67 : vector<16x128xf32>
    %70 = math.exp %69 : vector<16x128xf32>
    %71 = arith.mulf %42, %70 : vector<16x128xf32>
    %72 = arith.mulf %71, %39 : vector<16x128xf32>
    %73 = arith.mulf %72, %31 : vector<16x128xf32>
    %74 = arith.mulf %72, %33 : vector<16x128xf32>
    %75 = arith.truncf %73 : vector<16x128xf32> to vector<16x128xbf16>
    %cst_36 = arith.constant dense<0.000000e+00> : vector<16x128xf32>
    %76 = tpu.matmul %0, %75, %cst_36 {dimension_numbers = #tpu.dot_dimension_numbers<[1], [0], [0], [1], [0, 0, 1, 1], [], []>} : vector<16x16xbf16>, vector<16x128xbf16>, vector<16x128xf32> -> vector<16x128xf32>
    %77 = arith.truncf %74 : vector<16x128xf32> to vector<16x128xbf16>
    %cst_37 = arith.constant dense<0.000000e+00> : vector<16x128xf32>
    %78 = tpu.matmul %1, %77, %cst_37 {dimension_numbers = #tpu.dot_dimension_numbers<[1], [0], [0], [1], [0, 0, 1, 1], [], []>} : vector<16x16xbf16>, vector<16x128xbf16>, vector<16x128xf32> -> vector<16x128xf32>
    %79 = arith.addf %73, %74 : vector<16x128xf32>
    %80 = arith.truncf %79 : vector<16x128xf32> to vector<16x128xbf16>
    %cst_38 = arith.constant dense<0.000000e+00> : vector<16x128xf32>
    %81 = tpu.matmul %2, %80, %cst_38 {dimension_numbers = #tpu.dot_dimension_numbers<[1], [0], [0], [1], [0, 0, 1, 1], [], []>} : vector<16x16xbf16>, vector<16x128xbf16>, vector<16x128xf32> -> vector<16x128xf32>
    %82 = arith.addf %76, %78 : vector<16x128xf32>
    %83 = arith.subf %81, %76 : vector<16x128xf32>
    %84 = arith.addf %83, %78 : vector<16x128xf32>
    %85 = arith.truncf %82 : vector<16x128xf32> to vector<16x128xbf16>
    %cst_39 = arith.constant dense<0.000000e+00> : vector<16x128xf32>
    %86 = tpu.matmul %85, %3, %cst_39 {dimension_numbers = #tpu.dot_dimension_numbers<[1], [0], [0], [1], [0, 0, 1, 1], [], []>} : vector<16x128xbf16>, vector<128x128xbf16>, vector<16x128xf32> -> vector<16x128xf32>
    %87 = arith.truncf %84 : vector<16x128xf32> to vector<16x128xbf16>
    %cst_40 = arith.constant dense<0.000000e+00> : vector<16x128xf32>
    %88 = tpu.matmul %87, %4, %cst_40 {dimension_numbers = #tpu.dot_dimension_numbers<[1], [0], [0], [1], [0, 0, 1, 1], [], []>} : vector<16x128xbf16>, vector<128x128xbf16>, vector<16x128xf32> -> vector<16x128xf32>
    %89 = arith.addf %82, %84 : vector<16x128xf32>
    %90 = arith.truncf %89 : vector<16x128xf32> to vector<16x128xbf16>
    %cst_41 = arith.constant dense<0.000000e+00> : vector<16x128xf32>
    %91 = tpu.matmul %90, %6, %cst_41 {dimension_numbers = #tpu.dot_dimension_numbers<[1], [0], [0], [1], [0, 0, 1, 1], [], []>} : vector<16x128xbf16>, vector<128x128xbf16>, vector<16x128xf32> -> vector<16x128xf32>
    %92 = arith.addf %86, %88 : vector<16x128xf32>
    %93 = arith.subf %91, %86 : vector<16x128xf32>
    %94 = arith.addf %93, %88 : vector<16x128xf32>
    %95 = arith.mulf %92, %92 : vector<16x128xf32>
    %96 = arith.mulf %94, %94 : vector<16x128xf32>
    %97 = arith.addf %95, %96 : vector<16x128xf32>
    %98 = math.sqrt %97 : vector<16x128xf32>
    %c1_i32_42 = arith.constant 1 : i32
    %99 = tpu.dynamic_rotate %98 by %c1_i32_42 dim 0 : vector<16x128xf32>, i32 -> vector<16x128xf32>
    %cst_43 = arith.constant 0.000000e+00 : f32
    %100 = vector.broadcast %cst_43 : f32 to vector<16x128xf32>
    %101 = arith.select %12, %99, %100 : vector<16x128xi1>, vector<16x128xf32>
    %c15_i32_44 = arith.constant 15 : i32
    %102 = tpu.dynamic_rotate %98 by %c15_i32_44 dim 0 : vector<16x128xf32>, i32 -> vector<16x128xf32>
    %cst_45 = arith.constant 0.000000e+00 : f32
    %103 = vector.broadcast %cst_45 : f32 to vector<16x128xf32>
    %104 = arith.select %14, %102, %103 : vector<16x128xi1>, vector<16x128xf32>
    %cst_46 = arith.constant 0.001953125 : f32
    %105 = vector.broadcast %cst_46 : f32 to vector<16x128xf32>
    %106 = arith.mulf %105, %98 : vector<16x128xf32>
    %107 = arith.addf %101, %104 : vector<16x128xf32>
    %cst_47 = arith.constant 9.765625E-4 : f32
    %108 = vector.broadcast %cst_47 : f32 to vector<16x128xf32>
    %109 = arith.mulf %108, %107 : vector<16x128xf32>
    %110 = arith.addf %106, %109 : vector<16x128xf32>
    %c1_i32_48 = arith.constant 1 : i32
    %111 = tpu.dynamic_rotate %110 by %c1_i32_48 dim 1 : vector<16x128xf32>, i32 -> vector<16x128xf32>
    %cst_49 = arith.constant 0.000000e+00 : f32
    %112 = vector.broadcast %cst_49 : f32 to vector<16x128xf32>
    %113 = arith.select %16, %111, %112 : vector<16x128xi1>, vector<16x128xf32>
    %c127_i32_50 = arith.constant 127 : i32
    %114 = tpu.dynamic_rotate %110 by %c127_i32_50 dim 1 : vector<16x128xf32>, i32 -> vector<16x128xf32>
    %cst_51 = arith.constant 0.000000e+00 : f32
    %115 = vector.broadcast %cst_51 : f32 to vector<16x128xf32>
    %116 = arith.select %18, %114, %115 : vector<16x128xi1>, vector<16x128xf32>
    %cst_52 = arith.constant 5.000000e-01 : f32
    %117 = vector.broadcast %cst_52 : f32 to vector<16x128xf32>
    %118 = arith.mulf %117, %110 : vector<16x128xf32>
    %119 = arith.addf %113, %116 : vector<16x128xf32>
    %cst_53 = arith.constant 2.500000e-01 : f32
    %120 = vector.broadcast %cst_53 : f32 to vector<16x128xf32>
    %121 = arith.mulf %120, %119 : vector<16x128xf32>
    %122 = arith.addf %118, %121 : vector<16x128xf32>
    %c0_54 = arith.constant 0 : index
    %c0_55 = arith.constant 0 : index
    %c0_56 = arith.constant 0 : index
    %123 = vector.load %arg9[%c0_54, %c0_55, %c0_56] : memref<1x16x128xf32, #tpu.memory_space<vmem>>, vector<1x16x128xf32>
    %124 = vector.shape_cast %123 : vector<1x16x128xf32> to vector<16x128xf32>
    %125 = vector.shape_cast %122 : vector<16x128xf32> to vector<1x16x128xf32>
    tpu.vector_store %arg9[%c0_54, %c0_55, %c0_56], %125 {strides = array<i32>} : memref<1x16x128xf32, #tpu.memory_space<vmem>>, vector<1x16x128xf32>,
    return
  }
  func.func @transform_0(%arg0: i32) -> (i32, i32, i32) {
    %c0_i32 = arith.constant 0 : i32
    %c0_i32_0 = arith.constant 0 : i32
    %c0_i32_1 = arith.constant 0 : i32
    return %arg0, %c0_i32, %c0_i32_0 : i32, i32, i32
  }
  func.func @transform_1(%arg0: i32) -> (i32, i32) {
    %c0_i32 = arith.constant 0 : i32
    %c0_i32_0 = arith.constant 0 : i32
    %c0_i32_1 = arith.constant 0 : i32
    return %c0_i32, %c0_i32_0 : i32, i32
  }
  func.func @transform_2(%arg0: i32) -> (i32, i32) {
    %c0_i32 = arith.constant 0 : i32
    %c0_i32_0 = arith.constant 0 : i32
    %c0_i32_1 = arith.constant 0 : i32
    return %c0_i32, %c0_i32_0 : i32, i32
  }
  func.func @transform_3(%arg0: i32) -> (i32, i32) {
    %c0_i32 = arith.constant 0 : i32
    %c0_i32_0 = arith.constant 0 : i32
    %c0_i32_1 = arith.constant 0 : i32
    return %c0_i32, %c0_i32_0 : i32, i32
  }
  func.func @transform_4(%arg0: i32) -> (i32, i32) {
    %c0_i32 = arith.constant 0 : i32
    %c0_i32_0 = arith.constant 0 : i32
    %c0_i32_1 = arith.constant 0 : i32
    return %c0_i32, %c0_i32_0 : i32, i32
  }
  func.func @transform_5(%arg0: i32) -> (i32, i32) {
    %c0_i32 = arith.constant 0 : i32
    %c0_i32_0 = arith.constant 0 : i32
    %c0_i32_1 = arith.constant 0 : i32
    return %c0_i32, %c0_i32_0 : i32, i32
  }
  func.func @transform_6(%arg0: i32) -> (i32, i32) {
    %c0_i32 = arith.constant 0 : i32
    %c0_i32_0 = arith.constant 0 : i32
    %c0_i32_1 = arith.constant 0 : i32
    return %c0_i32, %c0_i32_0 : i32, i32
  }
  func.func @transform_7(%arg0: i32) -> (i32, i32) {
    %c0_i32 = arith.constant 0 : i32
    %c0_i32_0 = arith.constant 0 : i32
    %c0_i32_1 = arith.constant 0 : i32
    return %c0_i32, %c0_i32_0 : i32, i32
  }
  func.func @transform_8(%arg0: i32) -> (i32, i32, i32) {
    %c0_i32 = arith.constant 0 : i32
    %c0_i32_0 = arith.constant 0 : i32
    %c0_i32_1 = arith.constant 0 : i32
    return %arg0, %c0_i32, %c0_i32_0 : i32, i32, i32
  }
}

</mosaic_0001>

<bundles_post_ra>
// kernel: tpu_custom_call.1
= control target key start
LH: loop header
LB: loop body
LE: loop exit
PB: predicated region body
PF: predicated region fallthrough
CT: control target
= control target key end

     0   :  { %s2316_s0 = inlined_call_operand.hbm [shape: f32[2,16,128], index: 0, kind: input, shape index: {}]   ;;  %s2317_s1 = inlined_call_operand.hbm [shape: bf16[16,16], index: 1, kind: input, shape index: {}]   ;;  %s2318_s2 = inlined_call_operand.hbm [shape: bf16[16,16], index: 2, kind: input, shape index: {}]   ;;  %s2319_s3 = inlined_call_operand.hbm [shape: bf16[16,16], index: 3, kind: input, shape index: {}]   ;;  %s2320_s4 = inlined_call_operand.hbm [shape: bf16[128,128], index: 4, kind: input, shape index: {}]   ;;  %s2321_s5 = inlined_call_operand.hbm [shape: bf16[128,128], index: 5, kind: input, shape index: {}]   ;;  %s2322_s6 = inlined_call_operand.hbm [shape: bf16[128,128], index: 6, kind: input, shape index: {}]   ;;  %s2323_s7 = inlined_call_operand.hbm [shape: bf16[128,128], index: 7, kind: input, shape index: {}]   ;;  %s2324_s8 = inlined_call_operand.hbm [shape: f32[2,16,128], index: 8, kind: output, shape index: {}]  }
   0x1   :  { %2325 = sst [smem:[#allocation23_spill]] %s2317_s1 }
   0x2   :  { %2326 = sst [smem:[#allocation24_spill]] %s2318_s2 }
   0x3   :  { %2327 = sst [smem:[#allocation25_spill]] %s2319_s3 }
   0x4   :  { %13 = vsyncpa [#allocation3], 0 }
   0x5   :  { %15 = vsyncpa [#allocation3 + $0x1], 0 }
   0x6   :  { %16 = vsyncpa [#allocation6], 0 }
   0x7   :  { %17 = vsyncpa [#allocation9], 0 }
   0x8   :  { %18 = vsyncpa [#allocation12], 0 }
   0x9   :  { %19 = vsyncpa [#allocation15], 0 }
   0xa   :  { %20 = vsyncpa [#allocation4], 0 }
   0xb   :  { %22 = vsyncpa [#allocation4 + $0x1], 0  ;;  %s1987_s27 = smov 0   ;;  %s1989_s28 = smov 0  }
   0xc   :  { %s1991_s29 = smov 0   ;;  %s1993_s30 = smov 0  }
   0xd LB: > { %s2328_s1 = sld [smem:[#allocation23_spill]]  ;;  %s2011_s12 = sadd.s32 4294967295, %s1925_s30   ;;  %s1925_s30 = sphi %s1993_s30, %s2346_s30   ;;  %s1921_s29 = sphi %s1991_s29, %s2345_s29   ;;  %s1917_s28 = sphi %s1989_s28, %s2344_s28   ;;  %s1913_s27 = sphi %s1987_s27, %s2343_s27  }
   0xe   : > { %p1253_p0 = scmp.ge.s32.totalorder %s1925_s30, 1  ;;  %p49_p1 = scmp.eq.s32.totalorder %s2011_s12, 0 }
   0xf   : > { %p232_p2 = scmp.lt.s32.totalorder %s1925_s30, 3  ;;  %s1927_s14 = smov [#allocation5]  }
  0x10   : > { %s245_s15 = sshll.u32 %s1927_s14, 4  ;;  %s2330_s3 = sld [smem:[#allocation25_spill]]  ;;  %s246_s15 = int_to_ptr.vmem [resolvable:$true] %s245_s15 }
  0x11   : > { %p2016_p3 = pnand %p1253_p0, %p232_p2  ;;  %s299_s22 = sshll.u32 %s2321_s5, 4  ;;  %s300_s22 = int_to_ptr.hbm [resolvable:$true] %s299_s22 }
  0x12   : > { %s1928_s23 = smov [#allocation8]   ;;  %s1929_s25 = smov 64  }
  0x13   : > { %s243_s11 = sshll.u32 %s2328_s1, 4  ;;  %p1494_p4 = pneg %p2016_p3  ;;  %s244_s11 = int_to_ptr.hbm [resolvable:$true] %s243_s11 }
  0x14   : > { %s273_s24 = sshll.u32 %s1928_s23, 4  ;;  %s1930_s26 = smov 4   ;;  %s274_s24 = int_to_ptr.vmem [resolvable:$true] %s273_s24 }
  0x15   : > { %p2028_p6 = pnand %p1494_p4, %p49_p1  ;;  %s2332_s2 = sld [smem:[#allocation24_spill]] }
  0x16   : > { %s271_s18 = sshll.u32 %s2330_s3, 4  ;;  %s1931_s16 = smov [#allocation11]   ;;  %s272_s18 = int_to_ptr.hbm [resolvable:$true] %s271_s18 }
  0x17   : > { %1497 = dma.hbm_to_vmem [thread:$0]  (!%p2028_p6), %s244_s11, 128, %s246_s15, [#allocation6], %s1929_s25, %s1929_s25, %s1930_s26  }
  0x18   : > { %1503 = dma.hbm_to_vmem [thread:$0]  (!%p2028_p6), %s272_s18, 128, %s274_s24, [#allocation9], %s1929_s25, %s1929_s25, %s1930_s26  }
  0x19   : > { %s301_s17 = sshll.u32 %s1931_s16, 4  ;;  %s1932_s11 = smov [#allocation7]   ;;  %s302_s17 = int_to_ptr.vmem [resolvable:$true] %s301_s17 }
  0x1a   : > { %1509 = dma.hbm_to_vmem [thread:$0]  (!%p2028_p6), %s300_s22, 1024, %s302_s17, [#allocation12], %s1929_s25, %s1929_s25, %s1930_s26  }
  0x1b   : > { %s257_s14 = sshll.u32 %s2332_s2, 4  ;;  %s259_s15 = sshll.u32 %s1932_s11, 4  ;;  %s258_s14 = int_to_ptr.hbm [resolvable:$true] %s257_s14  ;;  %s260_s15 = int_to_ptr.vmem [resolvable:$true] %s259_s15 }
  0x1c   : > { %s285_s18 = sshll.u32 %s2320_s4, 4  ;;  %s313_s9 = sshll.u32 %s2322_s6, 4  ;;  %s286_s18 = int_to_ptr.hbm [resolvable:$true] %s285_s18  ;;  %s314_s9 = int_to_ptr.hbm [resolvable:$true] %s313_s9 }
  0x1d   : > { %1500 = dma.hbm_to_vmem [thread:$0]  (!%p2028_p6), %s258_s14, 128, %s260_s15, [#allocation6], %s1929_s25, %s1929_s25, %s1930_s26  }
  0x1e   : > { %s1933_s22 = smov [#allocation10]   ;;  %s1934_s14 = smov [#allocation13]  }
  0x1f   : > { %s287_s10 = sshll.u32 %s1933_s22, 4  ;;  %s315_s16 = sshll.u32 %s1934_s14, 4  ;;  %s288_s10 = int_to_ptr.vmem [resolvable:$true] %s287_s10  ;;  %s316_s16 = int_to_ptr.vmem [resolvable:$true] %s315_s16 }
  0x20   : > { %1506 = dma.hbm_to_vmem [thread:$0]  (!%p2028_p6), %s286_s18, 1024, %s288_s10, [#allocation9], %s1929_s25, %s1929_s25, %s1930_s26  }
  0x21   : > { %s327_s15 = sshll.u32 %s2323_s7, 4  ;;  %s1935_s20 = smov [#allocation14]   ;;  %s328_s15 = int_to_ptr.hbm [resolvable:$true] %s327_s15 }
  0x22   : > { %1512 = dma.hbm_to_vmem [thread:$0]  (!%p2028_p6), %s314_s9, 1024, %s316_s16, [#allocation12], %s1929_s25, %s1929_s25, %s1930_s26  }
  0x23   : > { %s329_s21 = sshll.u32 %s1935_s20, 4  ;;  %s1252_s18 = sadd.s32 4294967294, %s1925_s30   ;;  %s330_s21 = int_to_ptr.vmem [resolvable:$true] %s329_s21 }
  0x24   : > { %1515 = dma.hbm_to_vmem [thread:$0]  (!%p2028_p6), %s328_s15, 1024, %s330_s21, [#allocation15], %s1929_s25, %s1929_s25, %s1930_s26  }
  0x25   : > { %s2084_s23 = sadd.s32 1, %s1925_s30   ;;  %s35_s24 = sadd.s32 1, %s1921_s29 }
  0x26   : > { %s32_s22 = ssub.s32 %s1925_s30, %s2084_s23  ;;  %p42_p7 = scmp.ne.s32.totalorder %s1921_s29, %s1917_s28 }
  0x27   : > { %p33_p8 = scmp.eq.s32.totalorder %s32_s22, 0  ;;  %p43_p9 = scmp.eq.s32.totalorder %s1925_s30, 0 }
  0x28   : > { %p48_p10 = scmp.ne.s32.totalorder %s1917_s28, %s1913_s27  ;;  %p219_p11 = scmp.eq.s32.totalorder %s2011_s12, 1 }
  0x29   : > { %s2096_s9 = scalar_select %p33_p8, %s1921_s29, %s35_s24  }
  0x2a   : > { %p2098_p12 = por %p43_p9, %p42_p7  ;;  %p2104_p13 = por %p49_p1, %p48_p10 }
  0x2b   : > { %p2108_p0 = por %p219_p11, %p42_p7  ;;  %p225_p2 = scmp.eq.s32.totalorder %s1252_s18, 1 }
  0x2c   : > { %p1531_p4 = scmp.lt.s32.totalorder %s1925_s30, 2  ;;  %s343_s10 = sand.u32 1, %s1921_s29  }
  0x2d   : > { %p2114_p6 = por %p225_p2, %p48_p10  ;;  %s1262_s16 = sshll.u32 %s343_s10, 4 }
  0x2e   : > { %s1425_s17 = sshll.u32 %s1925_s30, 4  ;;  %s347_s24 = scalar_lea.vmem [#allocation2], %s1262_s16 }
  0x2f   : > { %s352_s20 = scalar_lea.hbm %s2316_s0, %s1425_s17  ;;  %s355_s22 = sshll.u32 %s347_s24, 4  ;;  %s356_s22 = int_to_ptr.vmem [resolvable:$true] %s355_s22 }
  0x30   : > { %s353_s21 = sshll.u32 %s352_s20, 4  ;;  %p2124_p7 = pnand %p1531_p4, %p2098_p12  ;;  %s354_s21 = int_to_ptr.hbm [resolvable:$true] %s353_s21 }
  0x31   : > { %s344_s1 = scalar_lea.sflag [#allocation3], %s343_s10  ;;  %s1813_s2 = sshra.s32 %s354_s21, 4  ;;  %s1814_s2 = int_to_ptr.hbm [resolvable:$true] %s1813_s2 }
  0x32   : > { %s1815_s3 = scalar_lea.hbm %s1814_s2, 16  ;;  %p1817_p9 = pneg %p2124_p7 }
  0x33   : > { %p1816_p8 = scmp.ne.s32.totalorder %s1814_s2, %s1815_s3  ;;  %s1820_s11 = scalar_lea.hbm %s2316_s0, 32 }
  0x34   : > { %p1821_p12 = scmp.lt.s32.totalorder %s1814_s2, %s2316_s0  ;;  %p1822_p2 = scmp.lt.s32.totalorder %s1820_s11, %s1815_s3 }
  0x35   : > { %p1818_p10 = pnand %p1817_p9, %p1816_p8 }
  0x36   : > { %p1823_p4 = por %p1822_p2, %p1821_p12 }
  0x37   : > { %p1819_p11 = pneg %p1818_p10 }
  0x39   : > { %p1824_p5 = pnand %p1823_p4, %p1819_p11 }
  0x3b   : > { %1827 = shalt.err (!%p1824_p5)
}
  0x3c   : > { %s1936_s10 = smov 128   ;;  %s1937_s20 = smov 8  }
  0x3d   : > { %1519 = dma.hbm_to_vmem [thread:$0]  (!%p2124_p7), %s354_s21, 256, %s356_s22, %s344_s1, %s1936_s10, %s1936_s10, %s1937_s20  }
  0x3e   : > { %367 = sbr.rel (%p2016_p3) target bundleno = 1027 (0x403), region = 52  ;;  %s2141_s24 = sand.u32 (!%p2016_p3), 1, %s1917_s28  }
  0x3f   : > { %s1266_s2 = sshll.u32 (!%p2016_p3), %s2141_s24, 4  ;;  %s370_s3 = scalar_lea.sflag (!%p2016_p3), [#allocation3], %s2141_s24 }
  0x40   : > { %s373_s17 = scalar_lea.vmem (!%p2016_p3), [#allocation2], %s1266_s2 }
  0x43   : > { %1888 = dma.done.wait (%p2104_p13), %s370_s3, 256  }
  0x44   : > { %1890 = vsyncadd (%p2104_p13), %s370_s3, 4294967040 }
  0x45   : > { %1892 = dma.done.wait (%p49_p1), [#allocation6], 256  }
  0x46   : > { %1894 = vsyncadd (%p49_p1), [#allocation6], 4294967040 }
  0x47   : > { %1896 = dma.done.wait (%p49_p1), [#allocation9], 1152  }
  0x48   : > { %1898 = vsyncadd (%p49_p1), [#allocation9], 4294966144 }
  0x49   : > { %1900 = dma.done.wait (%p49_p1), [#allocation12], 2048  }
  0x4a   : > { %1902 = vsyncadd (%p49_p1), [#allocation12], 4294965248 }
  0x4b   : > { %1904 = dma.done.wait (%p49_p1), [#allocation15], 1024  }
  0x4c   : > { %1906 = vsyncadd (%p49_p1), [#allocation15], 4294966272  ;;  %v525_v0 = vld [vmem:[%s373_s17] sm:$0xff]  ;;  %v526_v1 = vld [vmem:[%s373_s17 + $0x8] sm:$0xff]  ;;  %vm533_vm0 = vcmask 130048   ;;  %s1938_s1 = smov 127  }
  0x4d   : > { %v527_v2 = vpack.c.bf16 %v526_v1, %v525_v0  ;;  %v2167_v3 = vld [vmem:[#allocation5] sm:$0xff]  ;;  %v1444_v4 = vld [vmem:[#allocation11 + $0x38] sm:$0xff]  ;;  %v2169_v5 = vld [vmem:[#allocation7] sm:$0xff]  ;;  %s1939_s13 = smov 1   ;;  %s1461_s25 = sshll.u32 %s2011_s12, 4 }
  0x4e   : > { %v1436_v6 = vld [vmem:[#allocation10 + $0x38] sm:$0xff]  ;;  %685 = vmatpush.bf16.msra.mxu3 %v1444_v4  ;;  %v1443_v8 = vld [vmem:[#allocation11 + $0x30] sm:$0xff]  ;;  %v1442_v11 = vld [vmem:[#allocation11 + $0x28] sm:$0xff]  ;;  %s1108_s18 = scalar_lea.hbm %s2324_s8, %s1461_s25  ;;  %s441_s16 = scalar_lea.vmem [#allocation16], %s1266_s2 }
  0x4f   : > { %v1452_v7 = vld [vmem:[#allocation13 + $0x38] sm:$0xff]  ;;  %544 = vmatpush.bf16.msra.mxu2 %v527_v2  ;;  %566 = vmatpush.bf16.msra.mxu1 %v527_v2  ;;  %v1435_v9 = vld [vmem:[#allocation10 + $0x30] sm:$0xff]  ;;  %v1434_v12 = vld [vmem:[#allocation10 + $0x28] sm:$0xff]  ;;  %s1109_s12 = sshll.u32 %s441_s16, 4  ;;  %s1111_s11 = sshll.u32 %s1108_s18, 4  ;;  %s1110_s12 = int_to_ptr.vmem [resolvable:$true] %s1109_s12  ;;  %s1112_s11 = int_to_ptr.hbm [resolvable:$true] %s1111_s11 }
  0x50   : > { %750 = vmatpush.bf16.msra.mxu0 %v1452_v7  ;;  %v1451_v10 = vld [vmem:[#allocation13 + $0x30] sm:$0xff]  ;;  %v1450_v13 = vld [vmem:[#allocation13 + $0x28] sm:$0xff]  ;;  %v1441_v14 = vld [vmem:[#allocation11 + $0x20] sm:$0xff]  ;;  %s1097_s15 = scalar_lea.sflag [#allocation4], %s2141_s24  ;;  %s1857_s19 = sshra.s32 %s1112_s11, 4  ;;  %s1858_s19 = int_to_ptr.hbm [resolvable:$true] %s1857_s19 }
  0x51   : > { %v1433_v15 = vld [vmem:[#allocation10 + $0x20] sm:$0xff]  ;;  %v1440_v16 = vld [vmem:[#allocation11 + $0x18] sm:$0xff]  ;;  %v1439_v17 = vld [vmem:[#allocation11 + $0x10] sm:$0xff]  ;;  %s1859_s10 = scalar_lea.hbm %s1858_s19, 16  ;;  %s1863_s3 = scalar_lea.hbm %s2324_s8, 32 }
  0x52   : > { %1279 = vmatmul.msk.bf16.vlgmr.msra.gmra.mxu2 %vm533_vm0, %v2167_v3  ;;  %1284 = vmatmul.msk.bf16.vlgmr.msra.gmra.mxu1 %vm533_vm0, %v2169_v5  ;;  %v1449_v18 = vld [vmem:[#allocation13 + $0x20] sm:$0xff]  ;;  %v1432_v19 = vld [vmem:[#allocation10 + $0x18] sm:$0xff]  ;;  %v1438_v20 = vld [vmem:[#allocation11 + $0x8] sm:$0xff]  ;;  %p1860_p1 = scmp.ne.s32.totalorder %s1858_s19, %s1859_s10  ;;  %p1864_p13 = scmp.lt.s32.totalorder %s1858_s19, %s2324_s8 }
  0x53   : > { %622 = vmatpush.bf16.msrb.mxu2 %v1436_v6  ;;  %686 = vmatpush.bf16.msra.mxu3 %v1443_v8  ;;  %v1448_v21 = vld [vmem:[#allocation13 + $0x18] sm:$0xff]  ;;  %v1431_v22 = vld [vmem:[#allocation10 + $0x10] sm:$0xff]  ;;  %v1437_v23 = vld [vmem:[#allocation11] sm:$0xff]  ;;  %p1865_p7 = scmp.lt.s32.totalorder %s1863_s3, %s1859_s10 }
  0x54   : > { %751 = vmatpush.bf16.msra.mxu0 %v1451_v10  ;;  %v1447_v24 = vld [vmem:[#allocation13 + $0x10] sm:$0xff]  ;;  %v1430_v25 = vld [vmem:[#allocation10 + $0x8] sm:$0xff]  ;;  %v1429_v27 = vld [vmem:[#allocation10] sm:$0xff]  ;;  %p1861_p3 = pnand %p1860_p1, %p2108_p0 }
  0x55   : > { %v1446_v26 = vld [vmem:[#allocation13 + $0x8] sm:$0xff]  ;;  %v1445_v28 = vld [vmem:[#allocation13] sm:$0xff]  ;;  %p1866_p8 = por %p1865_p7, %p1864_p13 }
  0x56   : > { %p1862_p5 = pneg %p1861_p3 }
  0x57   : > { %623 = vmatpush.bf16.msrb.mxu2 %v1435_v9  ;;  %687 = vmatpush.bf16.msra.mxu3 %v1442_v11 }
  0x58   : > { %752 = vmatpush.bf16.msra.mxu0 %v1450_v13  ;;  %p1867_p9 = pnand %p1866_p8, %p1862_p5 }
  0x5b   : > { %624 = vmatpush.bf16.msrb.mxu2 %v1434_v12  ;;  %688 = vmatpush.bf16.msra.mxu3 %v1441_v14 }
  0x5c   : > { %753 = vmatpush.bf16.msra.mxu0 %v1449_v18 }
  0x5f   : > { %625 = vmatpush.bf16.msrb.mxu2 %v1433_v15  ;;  %689 = vmatpush.bf16.msra.mxu3 %v1440_v16 }
  0x60   : > { %754 = vmatpush.bf16.msra.mxu0 %v1448_v21 }
  0x63   : > { %690 = vmatpush.bf16.msra.mxu3 %v1439_v17  ;;  %626 = vmatpush.bf16.msrb.mxu2 %v1432_v19 }
  0x64   : > { %755 = vmatpush.bf16.msra.mxu0 %v1447_v24 }
  0x67   : > { %691 = vmatpush.bf16.msra.mxu3 %v1438_v20  ;;  %627 = vmatpush.bf16.msrb.mxu2 %v1431_v22 }
  0x68   : > { %756 = vmatpush.bf16.msra.mxu0 %v1446_v26 }
  0x6b   : > { %692 = vmatpush.bf16.msra.mxu3 %v1437_v23  ;;  %628 = vmatpush.bf16.msrb.mxu2 %v1430_v25 }
  0x6c   : > { %757 = vmatpush.bf16.msra.mxu0 %v1445_v28 }
  0x6f   : > { %924 = vmatpush.bf16.msrb.mxu3 %v1436_v6  ;;  %629 = vmatpush.bf16.msrb.mxu2 %v1429_v27 }
  0x70   : > { %939 = vmatpush.bf16.msrb.mxu0 %v1444_v4 }
  0x73   : > { %925 = vmatpush.bf16.msrb.mxu3 %v1435_v9 }
  0x74   : > { %940 = vmatpush.bf16.msrb.mxu0 %v1443_v8 }
  0x77   : > { %926 = vmatpush.bf16.msrb.mxu3 %v1434_v12 }
  0x78   : > { %941 = vmatpush.bf16.msrb.mxu0 %v1442_v11 }
  0x7b   : > { %927 = vmatpush.bf16.msrb.mxu3 %v1433_v15 }
  0x7c   : > { %942 = vmatpush.bf16.msrb.mxu0 %v1441_v14  ;;  %v513_v14 = vlaneseq }
  0x7f   : > { %928 = vmatpush.bf16.msrb.mxu3 %v1432_v19 }
  0x80   : > { %943 = vmatpush.bf16.msrb.mxu0 %v1440_v16  ;;  %v2203_v16 = vshrl.u32 %v513_v14, 7 }
  0x82   : > { %vm519_vm7 = vcmp.gt.s32.totalorder %v2203_v16, 0  ;;  %vm808_vm8 = vcmp.lt.s32.totalorder %v2203_v16, 1  ;;  %vm815_vm9 = vcmp.lt.s32.totalorder %v2203_v16, 7 }
  0x83   : > { %929 = vmatpush.bf16.msrb.mxu3 %v1431_v22 }
  0x84   : > { %944 = vmatpush.bf16.msrb.mxu0 %v1439_v17 }
  0x87   : > { %930 = vmatpush.bf16.msrb.mxu3 %v1430_v25 }
  0x88   : > { %945 = vmatpush.bf16.msrb.mxu0 %v1438_v20  ;;  %v2206_v20 = vadd.s32 8, %v2203_v16 }
  0x8a   : > { %vm522_vm10 = vcmp.lt.s32.totalorder %v2206_v20, 15 }
  0x8b   : > { %931 = vmatpush.bf16.msrb.mxu3 %v1429_v27 }
  0x8c   : > { %946 = vmatpush.bf16.msrb.mxu0 %v1437_v23 }
  0xcf   : > { %v568_v29 = vpop.f32.mrf.mxu1 }
  0xd5   : > { %v546_v30 = vpop.f32.mrf.mxu2 }
  0xd6   : > { %v699_v34 = vadd.f32 %v568_v29, %v546_v30 }
  0xd7   : > { %v570_v31 = vpop.f32.mrf.mxu1 }
  0xd8   : > { %v636_v32 = vpack.c.bf16 %v570_v31, %v568_v29 }
  0xda   : > { %693 = vmatmul.bf16.vlgmr.msra.gmra.mxu3 %v636_v32 }
  0xdd   : > { %v548_v33 = vpop.f32.mrf.mxu2 }
  0xde   : > { %v573_v35 = vpack.c.bf16 %v548_v33, %v546_v30  ;;  %v700_v36 = vadd.f32 %v570_v31, %v548_v33 }
  0xe0   : > { %630 = vmatmul.bf16.vlgmr.msrb.gmra.mxu2 %v573_v35  ;;  %v701_v37 = vpack.c.bf16 %v700_v36, %v699_v34 }
  0xe2   : > { %758 = vmatmul.bf16.vlgmr.msra.gmra.mxu0 %v701_v37 }
 0x15d   : > { %v694_v38 = vpop.f32.mrf.mxu3 }
 0x15f   : > { %v759_v39 = vpop.f32.mrf.mxu0 }
 0x163   : > { %v631_v40 = vpop.f32.mrf.mxu2 }
 0x164   : > { %v2175_v41 = vsub.f32 %v631_v40, %v694_v38  ;;  %v766_v42 = vsub.f32 %v759_v39, %v631_v40  ;;  %v517_v39 = vand.u32 127, %v513_v14 }
 0x165   : > { %v696_v47 = vpop.f32.mrf.mxu3 }
 0x166   : > { %v2177_v43 = vsub.f32 %v766_v42, %v694_v38  ;;  %v770_v44 = vmul.f32 %v2175_v41, %v2175_v41  ;;  %v518_v40 = vand.u32 15, %v517_v39 }
 0x167   : > { %v761_v48 = vpop.f32.mrf.mxu0 }
 0x168   : > { %v772_v45 = vmul.f32 %v2177_v43, %v2177_v43  ;;  %vm2228_vm11 = vcmp.lt.s32.totalorder %v518_v40, 15  ;;  %vm2232_vm12 = vcmp.gt.s32.totalorder %v518_v40, 0 }
 0x16a   : > { %v774_v46 = vadd.f32 %v772_v45, %v770_v44 }
 0x16b   : > { %v633_v49 = vpop.f32.mrf.mxu2 }
 0x16c   : > { %v776_v50 = vadd.f32 1e-30, %v774_v46  ;;  %v2183_v51 = vsub.f32 %v633_v49, %v696_v47  ;;  %v767_v52 = vsub.f32 %v761_v48, %v633_v49 }
 0x16e   : > { %1587 = vrsqrt.f32 %v776_v50  ;;  %v2185_v53 = vsub.f32 %v767_v52, %v696_v47  ;;  %v771_v54 = vmul.f32 %v2183_v51, %v2183_v51  ;;  %vm784_vm2 = vweird.f32 %v776_v50 }
 0x170   : > { %v773_v55 = vmul.f32 %v2185_v53, %v2185_v53 }
 0x172   : > { %v775_v56 = vadd.f32 %v773_v55, %v771_v54 }
 0x174   : > { %v1588_v57 = vpop.eup %1587  ;;  %v777_v58 = vadd.f32 1e-30, %v775_v56 }
 0x175   : > { %v779_v59 = vmul.f32 %v1588_v57, %v776_v50  ;;  %vm785_vm1 = vweird.f32 %v1588_v57 }
 0x176   : > { %1589 = vrsqrt.f32 %v777_v58  ;;  %vm786_vm3 = vmor %vm784_vm2, %vm785_vm1  ;;  %vm794_vm5 = vweird.f32 %v777_v58 }
 0x177   : > { %v780_v60 = vmul.f32 %v1588_v57, %v779_v59 }
 0x179   : > { %v781_v61 = vmul.f32 0.5, %v780_v60 }
 0x17b   : > { %v782_v62 = vsub.f32 1.5, %v781_v61 }
 0x17c   : > { %v1590_v63 = vpop.eup %1589 }
 0x17d   : > { %v783_v0 = vmul.f32 %v1588_v57, %v782_v62  ;;  %v789_v1 = vmul.f32 %v1590_v63, %v777_v58  ;;  %vm795_vm4 = vweird.f32 %v1590_v63 }
 0x17e   : > { %vm796_vm6 = vmor %vm794_vm5, %vm795_vm4 }
 0x17f   : > { %v2191_v2 = vsel %vm786_vm3, %v1588_v57, %v783_v0  ;;  %v790_v4 = vmul.f32 %v1590_v63, %v789_v1 }
 0x180   : > { %v798_v6 = vmul.f32 %v2191_v2, %v774_v46 }
 0x181   : > { %v791_v7 = vmul.f32 0.5, %v790_v4 }
 0x182   : > { %v2194_v9 = vadd.f32 4.539993e-05, %v798_v6 }
 0x183   : > { %v792_v8 = vsub.f32 1.5, %v791_v7 }
 0x184   : > { %1591 = vlog2.f32 %v2194_v9 }
 0x185   : > { %v793_v10 = vmul.f32 %v1590_v63, %v792_v8 }
 0x187   : > { %v2196_v11 = vsel %vm796_vm6, %v1590_v63, %v793_v10 }
 0x188   : > { %v799_v12 = vmul.f32 %v2196_v11, %v775_v56 }
 0x18a   : > { %v2200_v13 = vadd.f32 4.539993e-05, %v799_v12  ;;  %v1592_v15 = vpop.eup %1591 }
 0x18b   : > { %v803_v17 = vmul.f32 0.6931472, %v1592_v15 }
 0x18c   : > { %1593 = vlog2.f32 %v2200_v13 }
 0x18d   : > { %v806_v21 = vrot.slane %v803_v17, 7  ;;  %v813_v23 = vrot.slane %v803_v17, 1  ;;  %v820_v32 = vmul.f32 0.33333334, %v803_v17 }
 0x192   : > { %v1594_v18 = vpop.eup %1593 }
 0x193   : > { %v805_v19 = vmul.f32 0.6931472, %v1594_v18 }
 0x195   : > { %v807_v22 = vrot.slane %v805_v19, 7  ;;  %v814_v24 = vrot.slane %v805_v19, 1  ;;  %v821_v37 = vmul.f32 0.33333334, %v805_v19 }
 0x197   : > { %v810_v25 = vsel %vm808_vm8, %v807_v22, %v806_v21  ;;  %v816_v26 = vsel %vm815_vm9, %v813_v23, %v814_v24  ;;  %v817_v27 = vsel %vm815_vm9, %v814_v24, %v813_v23  ;;  %v809_v30 = vsel %vm808_vm8, %v806_v21, %v807_v22 }
 0x198   : > { %v811_v28 = vsel %vm519_vm7, %v810_v25, 0.0  ;;  %v819_v31 = vsel %vm522_vm10, %v817_v27, 0.0  ;;  %v1454_v25 = vld [vmem:[#allocation14 + $0x8] sm:$0xff] }
 0x199   : > { %v822_v29 = vadd.f32 %v816_v26, %v811_v28  ;;  %v823_v35 = vadd.f32 %v819_v31, %v809_v30 }
 0x19b   : > { %v824_v33 = vmul.f32 0.33333334, %v822_v29  ;;  %v825_v36 = vmul.f32 0.33333334, %v823_v35 }
 0x19d   : > { %v826_v34 = vadd.f32 %v824_v33, %v820_v32  ;;  %v827_v38 = vadd.f32 %v825_v36, %v821_v37 }
 0x19f   : > { %834 = vrot.lane.b32.xlu1 %v826_v34, %s1938_s1  ;;  %828 = vrot.lane.b32.xlu0 %v826_v34, %s1939_s13  ;;  %v840_v50 = vmul.f32 0.33333334, %v826_v34  ;;  %v841_v62 = vmul.f32 0.33333334, %v827_v38 }
 0x1a7   : > { %836 = vrot.lane.b32.xlu1 %v827_v38, %s1938_s1  ;;  %830 = vrot.lane.b32.xlu0 %v827_v38, %s1939_s13 }
 0x211   : > { %v835_v45 = vpop.permute.xlu1 %834  ;;  %v829_v46 = vpop.permute.xlu0 %828 }
 0x212   : > { %v838_v47 = vsel %vm2228_vm11, %v835_v45, 0.0  ;;  %v832_v48 = vsel %vm2232_vm12, %v829_v46, 0.0 }
 0x213   : > { %v842_v49 = vadd.f32 %v838_v47, %v832_v48 }
 0x215   : > { %v844_v52 = vmul.f32 0.33333334, %v842_v49 }
 0x217   : > { %v846_v54 = vadd.f32 %v844_v52, %v840_v50 }
 0x219   : > { %v848_v55 = vsub.f32 0.0, %v846_v54  ;;  %v837_v56 = vpop.permute.xlu1 %836  ;;  %v831_v57 = vpop.permute.xlu0 %830 }
 0x21a   : > { %v839_v58 = vsel %vm2228_vm11, %v837_v56, 0.0  ;;  %v833_v59 = vsel %vm2232_vm12, %v831_v57, 0.0 }
 0x21b   : > { %v850_v60 = vmul.f32 1.442695, %v848_v55  ;;  %v843_v61 = vadd.f32 %v839_v58, %v833_v59 }
 0x21d   : > { %1595 = vpow2.f32 %v850_v60  ;;  %v845_v63 = vmul.f32 0.33333334, %v843_v61 }
 0x21f   : > { %v847_v0 = vadd.f32 %v845_v63, %v841_v62 }
 0x221   : > { %v849_v1 = vsub.f32 0.0, %v847_v0 }
 0x223   : > { %v1596_v4 = vpop.eup %1595  ;;  %v852_v6 = vmul.f32 1.442695, %v849_v1 }
 0x224   : > { %v854_v7 = vmul.f32 %v1596_v4, %v2194_v9 }
 0x225   : > { %1597 = vpow2.f32 %v852_v6 }
 0x226   : > { %v856_v8 = vmul.f32 %v854_v7, %v2191_v2  ;;  %v1428_v2 = vld [vmem:[#allocation8] sm:$0xff] }
 0x228   : > { %v858_v15 = vmul.f32 %v856_v8, %v2175_v41  ;;  %v860_v17 = vmul.f32 %v856_v8, %v2177_v43  ;;  %v1460_v41 = vld [vmem:[#allocation14 + $0x38] sm:$0xff]  ;;  %v1459_v43 = vld [vmem:[#allocation14 + $0x30] sm:$0xff] }
 0x22a   : > { %v892_v22 = vadd.f32 %v860_v17, %v858_v15 }
 0x22b   : > { %v1598_v10 = vpop.eup %1597 }
 0x22c   : > { %v855_v12 = vmul.f32 %v1598_v10, %v2200_v13  ;;  %v1455_v13 = vld [vmem:[#allocation14 + $0x10] sm:$0xff] }
 0x22e   : > { %v857_v14 = vmul.f32 %v855_v12, %v2196_v11  ;;  %v1456_v11 = vld [vmem:[#allocation14 + $0x18] sm:$0xff] }
 0x230   : > { %v859_v18 = vmul.f32 %v857_v14, %v2183_v51  ;;  %v861_v19 = vmul.f32 %v857_v14, %v2185_v53  ;;  %v1458_v51 = vld [vmem:[#allocation14 + $0x28] sm:$0xff]  ;;  %v1457_v53 = vld [vmem:[#allocation14 + $0x20] sm:$0xff] }
 0x232   : > { %v862_v21 = vpack.c.bf16 %v859_v18, %v858_v15  ;;  %v893_v23 = vadd.f32 %v861_v19, %v859_v18  ;;  %v877_v24 = vpack.c.bf16 %v861_v19, %v860_v17 }
 0x234   : > { %870 = vmatpush.bf16.msrb.mxu1 %v862_v21  ;;  %v894_v9 = vpack.c.bf16 %v893_v23, %v892_v22 }
 0x236   : > { %910 = vmatpush.bf16.msra.mxu2 %v894_v9 }
 0x237   : > { %1381 = vmatmul.msk.bf16.vlgmr.msrb.gmra.mxu1 %vm533_vm0, %v2167_v3  ;;  %v1453_v3 = vld [vmem:[#allocation14] sm:$0xff] }
 0x238   : > { %885 = vmatpush.bf16.msra.mxu1 %v877_v24 }
 0x239   : > { %1387 = vmatmul.msk.bf16.vlgmr.msra.gmra.mxu2 %vm533_vm0, %v1428_v2 }
 0x23c   : > { %1004 = vmatpush.bf16.msrb.mxu1 %v1460_v41 }
 0x240   : > { %1005 = vmatpush.bf16.msrb.mxu1 %v1459_v43 }
 0x244   : > { %1006 = vmatpush.bf16.msrb.mxu1 %v1458_v51 }
 0x247   : > { %1382 = vmatmul.msk.bf16.vlgmr.msra.gmra.mxu1 %vm533_vm0, %v2169_v5 }
 0x248   : > { %1007 = vmatpush.bf16.msrb.mxu1 %v1457_v53 }
 0x24c   : > { %1008 = vmatpush.bf16.msrb.mxu1 %v1456_v11 }
 0x250   : > { %1009 = vmatpush.bf16.msrb.mxu1 %v1455_v13 }
 0x254   : > { %1010 = vmatpush.bf16.msrb.mxu1 %v1454_v25 }
 0x258   : > { %1011 = vmatpush.bf16.msrb.mxu1 %v1453_v3 }
 0x2b4   : > { %v872_v26 = vpop.f32.mrf.mxu1 }
 0x2bc   : > { %v874_v27 = vpop.f32.mrf.mxu1  ;;  %v912_v28 = vpop.f32.mrf.mxu2 }
 0x2bd   : > { %v919_v30 = vsub.f32 %v912_v28, %v872_v26 }
 0x2c4   : > { %v887_v5 = vpop.f32.mrf.mxu1  ;;  %v914_v29 = vpop.f32.mrf.mxu2 }
 0x2c5   : > { %v917_v31 = vadd.f32 %v887_v5, %v872_v26  ;;  %v921_v32 = vadd.f32 %v919_v30, %v887_v5  ;;  %v920_v33 = vsub.f32 %v914_v29, %v874_v27 }
 0x2c7   : > { %v953_v37 = vadd.f32 %v921_v32, %v917_v31 }
 0x2cc   : > { %v889_v34 = vpop.f32.mrf.mxu1 }
 0x2cd   : > { %v918_v35 = vadd.f32 %v889_v34, %v874_v27  ;;  %v922_v36 = vadd.f32 %v920_v33, %v889_v34 }
 0x2cf   : > { %v923_v38 = vpack.c.bf16 %v918_v35, %v917_v31  ;;  %v938_v39 = vpack.c.bf16 %v922_v36, %v921_v32  ;;  %v954_v40 = vadd.f32 %v922_v36, %v918_v35 }
 0x2d1   : > { %v955_v45 = vpack.c.bf16 %v954_v40, %v953_v37  ;;  %932 = vmatmul.bf16.vlgmr.msrb.gmra.mxu3 %v923_v38  ;;  %947 = vmatmul.bf16.vlgmr.msrb.gmra.mxu0 %v938_v39 }
 0x2d3   : > { %1012 = vmatmul.bf16.vlgmr.msrb.gmra.mxu1 %v955_v45 }
 0x34e   : > { %v948_v46 = vpop.f32.mrf.mxu0 }
 0x350   : > { %v1013_v47 = vpop.f32.mrf.mxu1 }
 0x354   : > { %v933_v48 = vpop.f32.mrf.mxu3 }
 0x355   : > { %v1018_v49 = vadd.f32 %v948_v46, %v933_v48  ;;  %v1020_v50 = vsub.f32 %v1013_v47, %v933_v48 }
 0x356   : > { %v950_v57 = vpop.f32.mrf.mxu0 }
 0x357   : > { %v1022_v52 = vadd.f32 %v1020_v50, %v948_v46  ;;  %v1024_v54 = vmul.f32 %v1018_v49, %v1018_v49 }
 0x358   : > { %v1015_v58 = vpop.f32.mrf.mxu1 }
 0x359   : > { %v1026_v55 = vmul.f32 %v1022_v52, %v1022_v52 }
 0x35b   : > { %v1028_v56 = vadd.f32 %v1026_v55, %v1024_v54 }
 0x35c   : > { %v935_v59 = vpop.f32.mrf.mxu3 }
 0x35d   : > { %1599 = vrsqrt.f32 %v1028_v56  ;;  %v1019_v60 = vadd.f32 %v950_v57, %v935_v59  ;;  %v1021_v61 = vsub.f32 %v1015_v58, %v935_v59  ;;  %vm1037_vm13 = vcmp.eq.f32.partialorder %v1028_v56, inf }
 0x35e   : > { %v1040_v24 = vand.u32 2147483648, %v1028_v56  ;;  %vm1039_vm14 = vcmp.eq.f32.partialorder %v1028_v56, 0.0 }
 0x35f   : > { %v1023_v62 = vadd.f32 %v1021_v61, %v950_v57  ;;  %v1025_v63 = vmul.f32 %v1019_v60, %v1019_v60 }
 0x361   : > { %v1027_v0 = vmul.f32 %v1023_v62, %v1023_v62 }
 0x363   : > { %v1600_v1 = vpop.eup %1599  ;;  %v1029_v4 = vadd.f32 %v1027_v0, %v1025_v63 }
 0x364   : > { %v1031_v6 = vmul.f32 %v1600_v1, %v1028_v56 }
 0x365   : > { %1601 = vrsqrt.f32 %v1029_v4  ;;  %vm1049_vm15 = vcmp.eq.f32.partialorder %v1029_v4, inf  ;;  %v1052_v41 = vand.u32 2147483648, %v1029_v4  ;;  %vm1051_vm0 = vcmp.eq.f32.partialorder %v1029_v4, 0.0 }
 0x366   : > { %v1032_v7 = vmul.f32 %v1600_v1, %v1031_v6 }
 0x368   : > { %v1033_v8 = vmul.f32 0.5, %v1032_v7 }
 0x36a   : > { %v1034_v10 = vsub.f32 1.5, %v1033_v8 }
 0x36b   : > { %v1602_v12 = vpop.eup %1601 }
 0x36c   : > { %v1043_v14 = vmul.f32 %v1602_v12, %v1029_v4  ;;  %v1035_v15 = vmul.f32 %v1600_v1, %v1034_v10 }
 0x36e   : > { %v1044_v17 = vmul.f32 %v1602_v12, %v1043_v14  ;;  %v1036_v18 = vmul.f32 %v1035_v15, %v1028_v56 }
 0x370   : > { %v1045_v19 = vmul.f32 0.5, %v1044_v17  ;;  %v1038_v22 = vsel %vm1037_vm13, %v1028_v56, %v1036_v18 }
 0x371   : > { %v1041_v2 = vsel %vm1039_vm14, %v1040_v24, %v1038_v22 }
 0x372   : > { %v1046_v21 = vsub.f32 1.5, %v1045_v19  ;;  %v1054_v53 = vrot.slane %v1041_v2, 7  ;;  %v1060_v13 = vrot.slane %v1041_v2, 1  ;;  %v1066_v32 = vmul.f32 0.001953125, %v1041_v2 }
 0x374   : > { %v1047_v23 = vmul.f32 %v1602_v12, %v1046_v21 }
 0x376   : > { %v1048_v9 = vmul.f32 %v1047_v23, %v1029_v4 }
 0x378   : > { %v1050_v43 = vsel %vm1049_vm15, %v1029_v4, %v1048_v9 }
 0x379   : > { %v1053_v51 = vsel %vm1051_vm0, %v1052_v41, %v1050_v43 }
 0x37a   : > { %v1055_v11 = vrot.slane %v1053_v51, 7  ;;  %v1061_v25 = vrot.slane %v1053_v51, 1  ;;  %v1067_v34 = vmul.f32 0.001953125, %v1053_v51 }
 0x37c   : > { %v1057_v3 = vsel %vm808_vm8, %v1055_v11, %v1054_v53  ;;  %v1062_v26 = vsel %vm815_vm9, %v1060_v13, %v1061_v25  ;;  %v1056_v27 = vsel %vm808_vm8, %v1054_v53, %v1055_v11  ;;  %v1063_v28 = vsel %vm815_vm9, %v1061_v25, %v1060_v13 }
 0x37d   : > { %v1058_v5 = vsel %vm519_vm7, %v1057_v3, 0.0  ;;  %v1065_v29 = vsel %vm522_vm10, %v1063_v28, 0.0 }
 0x37e   : > { %v1068_v30 = vadd.f32 %v1062_v26, %v1058_v5  ;;  %v1069_v31 = vadd.f32 %v1065_v29, %v1056_v27 }
 0x380   : > { %v1070_v33 = vmul.f32 0.0009765625, %v1068_v30  ;;  %v1071_v35 = vmul.f32 0.0009765625, %v1069_v31 }
 0x382   : > { %v1072_v36 = vadd.f32 %v1070_v33, %v1066_v32  ;;  %v1073_v37 = vadd.f32 %v1071_v35, %v1067_v34 }
 0x384   : > { %1080 = vrot.lane.b32.xlu0 %v1072_v36, %s1938_s1  ;;  %1074 = vrot.lane.b32.xlu2 %v1072_v36, %s1939_s13  ;;  %v1086_v50 = vmul.f32 0.5, %v1072_v36  ;;  %v1087_v54 = vmul.f32 0.5, %v1073_v37 }
 0x385   : > { %1082 = vrot.lane.b32.xlu1 %v1073_v37, %s1938_s1 }
 0x38c   : > { %1076 = vrot.lane.b32.xlu2 %v1073_v37, %s1939_s13 }
 0x3de   : > { %v1075_v16 = vpop.permute.xlu2 %1074 }
 0x3df   : > { %v1078_v39 = vsel %vm2232_vm12, %v1075_v16, 0.0 }
 0x3e6   : > { %v1077_v20 = vpop.permute.xlu2 %1076 }
 0x3e7   : > { %v1079_v46 = vsel %vm2232_vm12, %v1077_v20, 0.0 }
 0x3f6   : > { %v1081_v38 = vpop.permute.xlu0 %1080 }
 0x3f7   : > { %v1084_v40 = vsel %vm2228_vm11, %v1081_v38, 0.0  ;;  %v1083_v45 = vpop.permute.xlu1 %1082 }
 0x3f8   : > { %v1088_v47 = vadd.f32 %v1084_v40, %v1078_v39  ;;  %v1085_v48 = vsel %vm2228_vm11, %v1083_v45, 0.0 }
 0x3f9   : > { %v1089_v49 = vadd.f32 %v1085_v48, %v1079_v46 }
 0x3fa   : > { %v1090_v52 = vmul.f32 0.25, %v1088_v47 }
 0x3fb   : > { %v1091_v55 = vmul.f32 0.25, %v1089_v49 }
 0x3fc   : > { %v1092_v56 = vadd.f32 %v1090_v52, %v1086_v50 }
 0x3fd   : > { %v1093_v44 = vadd.f32 %v1091_v55, %v1087_v54 }
 0x3fe   : > { %1094 = vst [vmem:[%s441_s16] sm:$0xff] %v1092_v56 }
 0x3ff   : > { %1095 = vst [vmem:[%s441_s16 + $0x8] sm:$0xff] %v1093_v44 }
 0x400   : > { %1870 = shalt.err (!%p1867_p9)
}
 0x401   : > { %s1940_s24 = smov 128   ;;  %s1941_s13 = smov 8  }
 0x402   : > { %1492 = dma.vmem_to_hbm [thread:$0]  (%p2108_p0), %s1110_s12, 256, %s1112_s11, %s1097_s15, %s1940_s24, %s1940_s24, %s1941_s13  }
 0x403 PF: > { %s1126_s25 = sand.u32 1, %s1913_s27   ;;  %p2342_p10 = scmp.ge.s32.totalorder %s1925_s30, 2 }
 0x404   : > { %s1127_s21 = scalar_lea.sflag [#allocation4], %s1126_s25 }
 0x405   : > { %p1521_p11 = pnand %p2342_p10, %p2114_p6 }
 0x407   : > { %p1522_p12 = pneg %p1521_p11 }
 0x409   : > { %1908 = dma.done.wait (%p1522_p12), %s1127_s21, 256  }
 0x40a   : > { %1910 = vsyncadd (%p1522_p12), %s1127_s21, 4294967040  ;;  %p25_p2 = scmp.ge.s32.totalorder %s2084_s23, 4   ;;  %s2343_s27 = smov %s1917_s28 }
 0x40b   : > { %s2344_s28 = smov %s1921_s29  ;;  %s2345_s29 = smov %s2096_s9 }
 0x40c   : > { %s2346_s30 = smov %s2084_s23  ;;  %27 = sbr.rel (!%p25_p2) target bundleno = 13 (0xd), region = 125 }
 0x411   :  { %1133 = vsyncpa [#allocation3], 1 }
 0x412   :  { %1135 = vsyncpa [#allocation3 + $0x1], 1 }
 0x413   :  { %1136 = vsyncpa [#allocation6], 1 }
 0x414   :  { %1137 = vsyncpa [#allocation9], 1 }
 0x415   :  { %1138 = vsyncpa [#allocation12], 1 }
 0x416   :  { %1139 = vsyncpa [#allocation15], 1 }
 0x417   :  { %1140 = vsyncpa [#allocation4], 1 }
 0x418   :  { %1142 = vsyncpa [#allocation4 + $0x1], 1 }

</bundles_post_ra>
